<compile_context>
chip_gen: v7x
topology: tpu7x:2x2x1
jax: 0.10.0
libtpu: 0.0.40
codegen_flags: <defaults>
</compile_context>

<pallas_src>
import jax
import jax.numpy as jnp
import numpy as np
from jax.experimental import pallas as pl
from jax.experimental.pallas import tpu as pltpu

_NP = 128  # padded channel width (lane-dense)


# ------------------------------ fused kernel --------------------------------

def _fused_cnn_encoder(a1, w1m, b1m, w2t, b2m, *, dims):
    """conv1(+per-batch bias, ReLU) -> conv2(+bias, ReLU), all in VMEM."""
    (B, M1, K1P, OW1, OH2, OW2, COUT, KH, KW, M2A, PAD1) = dims

    def kernel(a1_ref, w1_ref, b1_ref, w2_ref, b2_ref, out_ref, act):
        # ---- layer 1: im2col'd matmul + per-batch bias (norm & ctx fold) + ReLU
        acc1 = jnp.dot(a1_ref[0], w1_ref[...],
                       preferred_element_type=jnp.float32)          # (M1, 128)
        y1 = jnp.maximum(acc1 + b1_ref[0], 0.0)
        act[0:M1, :] = y1                                            # keep in VMEM
        if PAD1 > M1:                                                # zero tail rows
            act[M1:PAD1, :] = jnp.zeros((PAD1 - M1, _NP), jnp.float32)

        # ---- layer 2: 3x3 stride-1 conv as 9 shifted matmuls over the flat
        #      (OH1*OW1, 128) plane resident in VMEM (overcompute, select later).
        acc2 = jnp.zeros((M2A, _NP), jnp.float32)
        for kh in range(KH):
            for kw in range(KW):
                shift = kh * OW1 + kw
                xs = act[shift:shift + M2A, :].astype(jnp.bfloat16)  # (M2A, 128)
                acc2 = acc2 + jnp.dot(xs, w2_ref[kh * KW + kw],
                                      preferred_element_type=jnp.float32)
        y2 = jnp.maximum(acc2 + b2_ref[...], 0.0)                    # (M2A, 128)

        # ---- select the valid OH2 x OW2 window (row stride OW1 in flat index)
        for oh in range(OH2):
            out_ref[0, oh, :, :] = y2[oh * OW1:oh * OW1 + OW2, :COUT]

    flops = 2 * B * (M1 * K1P * _NP + KH * KW * M2A * _NP * _NP)
    bytes_accessed = (a1.size * 2 + w1m.size * 2 + w2t.size * 2 +
                      b1m.size * 4 + b2m.size * 4 + B * OH2 * OW2 * COUT * 4)

    return pl.pallas_call(
        kernel,
        out_shape=jax.ShapeDtypeStruct((B, OH2, OW2, COUT), jnp.float32),
        grid=(B,),
        in_specs=[
            pl.BlockSpec((1, M1, K1P), lambda b: (b, 0, 0)),          # A1 (im2col)
            pl.BlockSpec((K1P, _NP), lambda b: (0, 0)),               # W1 (resident)
            pl.BlockSpec((1, 1, _NP), lambda b: (b, 0, 0)),           # per-batch bias1
            pl.BlockSpec((KH * KW, _NP, _NP), lambda b: (0, 0, 0)),   # W2 taps
            pl.BlockSpec((1, _NP), lambda b: (0, 0)),                 # bias2
        ],
        out_specs=pl.BlockSpec((1, OH2, OW2, COUT), lambda b: (b, 0, 0, 0)),
        scratch_shapes=[pltpu.VMEM((PAD1, _NP), jnp.float32)],
        compiler_params=pltpu.CompilerParams(
            dimension_semantics=("parallel",)),
        cost_estimate=pl.CostEstimate(flops=flops, transcendentals=0,
                                      bytes_accessed=bytes_accessed),
    )(a1, w1m, b1m, w2t, b2m)


# ------------------------------ encoder forward ------------------------------

def base_cnn_encoder_forward(obs, params, obs_shape, pixels=True, context=None):
    """Reproduces _BaseCNNEncoder.forward (neck = Identity) for the 2-layer CNN."""
    assert len(params) == 2, "fused kernel implements the 2-layer CNN instantiation"
    (w1, b1, s1), (w2, b2, s2) = params
    assert s2 == 1, "fused kernel assumes a stride-1 second conv"

    in_shape = obs.shape
    x = obs.reshape((-1,) + tuple(obs_shape)).astype(jnp.float32)
    B = x.shape[0]
    C, H, W = obs_shape
    Cout1, Cin1, KH, KW = w1.shape
    Cout2, Cin2, KH2, KW2 = w2.shape
    assert Cin2 == Cout1 and (KH2, KW2) == (KH, KW)
    Dc = int(context.shape[-1]) if context is not None else 0
    assert Cin1 == C + Dc

    OH1, OW1 = (H - KH) // s1 + 1, (W - KW) // s1 + 1
    OH2, OW2 = OH1 - KH + 1, OW1 - KW + 1
    M1 = OH1 * OW1
    K1 = C * KH * KW
    K1P = max(_NP, -(-K1 // _NP) * _NP)                 # lane-dense K for layer 1
    max_shift = (KH - 1) * OW1 + (KW - 1)
    M2A = -(-((OH2 - 1) * OW1 + OW2) // 8) * 8          # overcomputed rows (x8)
    PAD1 = max_shift + M2A                              # >= M1 by construction

    # ---- fold pixel normalization into conv1 (exact: conv is linear) ----
    scale = (1.0 / 255.0) if pixels else 1.0
    shift = (-0.5) if pixels else 0.0
    w1_pix = w1[:, :C] * scale                                     # (Cout1,C,KH,KW)
    bias1 = b1 + shift * jnp.sum(w1[:, :C], axis=(1, 2, 3))        # (Cout1,)

    # ---- fold the spatially-broadcast context into a per-batch bias ----
    if context is not None:
        ctx = context.reshape(B, Dc).astype(jnp.float32)
        s_ctx = jnp.sum(w1[:, C:], axis=(2, 3))                    # (Cout1, Dc)
        bias1_b = bias1[None, :] + ctx @ s_ctx.T                   # (B, Cout1)
    else:
        bias1_b = jnp.broadcast_to(bias1[None, :], (B, Cout1))

    # ---- layer-1 im2col on the raw input; columns ordered (c, kh, kw) = OIHW ----
    cols = []
    for i in range(KH):
        for j in range(KW):
            cols.append(x[:, :, i:i + s1 * (OH1 - 1) + 1:s1,
                              j:j + s1 * (OW1 - 1) + 1:s1])
    a1 = jnp.stack(cols, axis=2).reshape(B, K1, M1).transpose(0, 2, 1)  # (B,M1,K1)
    a1 = jnp.pad(a1, ((0, 0), (0, 0), (0, K1P - K1))).astype(jnp.bfloat16)

    w1m = jnp.pad(w1_pix.reshape(Cout1, K1).T,
                  ((0, K1P - K1), (0, _NP - Cout1))).astype(jnp.bfloat16)
    b1m = jnp.pad(bias1_b, ((0, 0), (0, _NP - Cout1))).reshape(B, 1, _NP)
    w2t = jnp.pad(jnp.transpose(w2, (2, 3, 1, 0)).reshape(KH * KW, Cin2, Cout2),
                  ((0, 0), (0, _NP - Cin2), (0, _NP - Cout2))).astype(jnp.bfloat16)
    b2m = jnp.pad(b2, (0, _NP - Cout2)).reshape(1, _NP)

    dims = (B, M1, K1P, OW1, OH2, OW2, Cout2, KH, KW, M2A, PAD1)
    out_nhwc = _fused_cnn_encoder(a1, w1m, b1m, w2t, b2m, dims=dims)

    h = jnp.transpose(out_nhwc, (0, 3, 1, 2))       # single NHWC->NCHW at the end
    return h.reshape(tuple(in_shape[:-3]) + (Cout2, OH2, OW2))
    # TODO(synk): target-network EMA / Adam optimizer are training-time state,
    # not part of the forward pass, and are intentionally not reproduced.


# ------------------------------ pure-JAX reference ---------------------------

def _ref_forward(obs, context, params, obs_shape, pixels=True):
    x = obs.reshape((-1,) + tuple(obs_shape)).astype(jnp.float32)
    if pixels:
        x = x / 255.0 - 0.5
    if context is not None:
        ctx = context.reshape(x.shape[0], context.shape[-1], 1, 1)
        ctx = jnp.broadcast_to(ctx, (x.shape[0], ctx.shape[1]) + x.shape[2:])
        x = jnp.concatenate([x, ctx], axis=1)
    for (w, b, s) in params:
        x = jax.lax.conv_general_dilated(
            x, w, (s, s), 'VALID',
            dimension_numbers=('NCHW', 'OIHW', 'NCHW'),
            precision=jax.lax.Precision.HIGHEST)
        x = jnp.maximum(x + b[None, :, None, None], 0.0)
    return x.reshape(tuple(obs.shape[:-3]) + tuple(x.shape[-3:]))


# ----------------------------------- main ------------------------------------

if __name__ == "__main__":
    key = jax.random.PRNGKey(0)
    k_w1, k_b1, k_w2, k_b2, k_obs, k_ctx = jax.random.split(key, 6)

    # Module config (small synthetic shapes)
    obs_shape = (4, 16, 16)          # (C, H, W)
    out_channels = 32
    pixels = True
    B, Dc = 2, 3
    in_ch = obs_shape[0] + Dc        # conv1 input channels after context concat

    # self.CNN parameters: two conv layers, OIHW weights, (weight, bias, stride)
    w1 = jax.random.normal(k_w1, (out_channels, in_ch, 3, 3), jnp.float32) * 0.1
    b1 = jax.random.normal(k_b1, (out_channels,), jnp.float32) * 0.01
    w2 = jax.random.normal(k_w2, (out_channels, out_channels, 3, 3), jnp.float32) * 0.1
    b2 = jax.random.normal(k_b2, (out_channels,), jnp.float32) * 0.01
    params = [(w1, b1, 2), (w2, b2, 1)]

    # Inputs: raw pixels in [0, 255] and a context vector
    obs = jax.random.uniform(k_obs, (B,) + obs_shape, jnp.float32) * 255.0
    context = jax.random.normal(k_ctx, (B, Dc), jnp.float32)

    fwd = jax.jit(lambda o, c: base_cnn_encoder_forward(
        o, params, obs_shape, pixels=pixels, context=c))
    h = jax.block_until_ready(fwd(obs, context))

    # repr_shape = (out_channels, 5, 5) for a 16x16 input through the two convs
    assert h.shape == (B, out_channels, 5, 5), h.shape

    h_ref = jax.block_until_ready(
        _ref_forward(obs, context, params, obs_shape, pixels=pixels))
    np.testing.assert_allclose(np.asarray(h), np.asarray(h_ref),
                               rtol=2e-2, atol=2e-2)

    print("KERNEL_OK")
</pallas_src>

<mosaic_0001>
module attributes {stable_mosaic.version = 11 : i64} {
  func.func @kernel(%arg0: i32, %arg1: memref<1x49x128xbf16, #tpu.memory_space<vmem>>, %arg2: memref<128x128xbf16, #tpu.memory_space<vmem>>, %arg3: memref<1x1x128xf32, #tpu.memory_space<vmem>>, %arg4: memref<9x128x128xbf16, #tpu.memory_space<vmem>>, %arg5: memref<1x128xf32, #tpu.memory_space<vmem>>, %arg6: memref<1x5x5x32xf32, #tpu.memory_space<vmem>>, %arg7: memref<56x128xf32, #tpu.memory_space<vmem>>) attributes {dimension_semantics = [#tpu.dimension_semantics<parallel>], iteration_bounds = array<i64: 2>, scalar_prefetch = 0 : i64, scratch_operands = 1 : i64, tpu.core_type = #tpu.core_type<tc>, window_params = [{transform_indices = @transform_0, window_bounds = array<i64: 1, 49, 128>}, {pipeline_mode = #tpu.pipeline_mode<synchronous>, transform_indices = @transform_1, window_bounds = array<i64: 128, 128>}, {transform_indices = @transform_2, window_bounds = array<i64: 1, 1, 128>}, {pipeline_mode = #tpu.pipeline_mode<synchronous>, transform_indices = @transform_3, window_bounds = array<i64: 9, 128, 128>}, {pipeline_mode = #tpu.pipeline_mode<synchronous>, transform_indices = @transform_4, window_bounds = array<i64: 1, 128>}, {transform_indices = @transform_5, window_bounds = array<i64: 1, 5, 5, 32>}]} {
    %c0 = arith.constant 0 : index
    %c0_0 = arith.constant 0 : index
    %c0_1 = arith.constant 0 : index
    %0 = vector.load %arg1[%c0, %c0_0, %c0_1] : memref<1x49x128xbf16, #tpu.memory_space<vmem>>, vector<1x49x128xbf16>
    %1 = vector.shape_cast %0 : vector<1x49x128xbf16> to vector<49x128xbf16>
    %c0_2 = arith.constant 0 : index
    %c0_3 = arith.constant 0 : index
    %2 = vector.load %arg2[%c0_2, %c0_3] : memref<128x128xbf16, #tpu.memory_space<vmem>>, vector<128x128xbf16>
    %cst = arith.constant dense<0.000000e+00> : vector<49x128xf32>
    %3 = tpu.matmul %1, %2, %cst {dimension_numbers = #tpu.dot_dimension_numbers<[1], [0], [0], [1], [0, 0, 1, 1], [], []>} : vector<49x128xbf16>, vector<128x128xbf16>, vector<49x128xf32> -> vector<49x128xf32>
    %c0_4 = arith.constant 0 : index
    %c0_5 = arith.constant 0 : index
    %c0_6 = arith.constant 0 : index
    %4 = vector.load %arg3[%c0_4, %c0_5, %c0_6] : memref<1x1x128xf32, #tpu.memory_space<vmem>>, vector<1x1x128xf32>
    %5 = vector.shape_cast %4 : vector<1x1x128xf32> to vector<1x128xf32>
    %6 = vector.broadcast %5 : vector<1x128xf32> to vector<49x128xf32>
    %7 = arith.addf %3, %6 : vector<49x128xf32>
    %cst_7 = arith.constant 0.000000e+00 : f32
    %8 = vector.broadcast %cst_7 : f32 to vector<49x128xf32>
    %9 = arith.maximumf %7, %8 : vector<49x128xf32>
    %c0_8 = arith.constant 0 : index
    %c0_9 = arith.constant 0 : index
    %10 = vector.load %arg7[%c0_8, %c0_9] : memref<56x128xf32, #tpu.memory_space<vmem>>, vector<49x128xf32>
    tpu.vector_store %arg7[%c0_8, %c0_9], %9 {strides = array<i32>} : memref<56x128xf32, #tpu.memory_space<vmem>>, vector<49x128xf32>,
    %cst_10 = arith.constant 0.000000e+00 : f32
    %11 = vector.broadcast %cst_10 : f32 to vector<7x128xf32>
    %c49 = arith.constant 49 : index
    %c0_11 = arith.constant 0 : index
    %12 = vector.load %arg7[%c49, %c0_11] : memref<56x128xf32, #tpu.memory_space<vmem>>, vector<7x128xf32>
    tpu.vector_store %arg7[%c49, %c0_11], %11 {strides = array<i32>} : memref<56x128xf32, #tpu.memory_space<vmem>>, vector<7x128xf32>,
    %cst_12 = arith.constant 0.000000e+00 : f32
    %13 = vector.broadcast %cst_12 : f32 to vector<40x128xf32>
    %c0_13 = arith.constant 0 : index
    %c0_14 = arith.constant 0 : index
    %14 = vector.load %arg7[%c0_13, %c0_14] : memref<56x128xf32, #tpu.memory_space<vmem>>, vector<40x128xf32>
    %15 = arith.truncf %14 : vector<40x128xf32> to vector<40x128xbf16>
    %c0_15 = arith.constant 0 : index
    %c0_16 = arith.constant 0 : index
    %c0_17 = arith.constant 0 : index
    %16 = vector.load %arg4[%c0_15, %c0_16, %c0_17] : memref<9x128x128xbf16, #tpu.memory_space<vmem>>, vector<1x128x128xbf16>
    %17 = vector.shape_cast %16 : vector<1x128x128xbf16> to vector<128x128xbf16>
    %cst_18 = arith.constant dense<0.000000e+00> : vector<40x128xf32>
    %18 = tpu.matmul %15, %17, %cst_18 {dimension_numbers = #tpu.dot_dimension_numbers<[1], [0], [0], [1], [0, 0, 1, 1], [], []>} : vector<40x128xbf16>, vector<128x128xbf16>, vector<40x128xf32> -> vector<40x128xf32>
    %19 = arith.addf %13, %18 : vector<40x128xf32>
    %c1 = arith.constant 1 : index
    %c0_19 = arith.constant 0 : index
    %20 = vector.load %arg7[%c1, %c0_19] : memref<56x128xf32, #tpu.memory_space<vmem>>, vector<40x128xf32>
    %21 = arith.truncf %20 : vector<40x128xf32> to vector<40x128xbf16>
    %c1_20 = arith.constant 1 : index
    %c0_21 = arith.constant 0 : index
    %c0_22 = arith.constant 0 : index
    %22 = vector.load %arg4[%c1_20, %c0_21, %c0_22] : memref<9x128x128xbf16, #tpu.memory_space<vmem>>, vector<1x128x128xbf16>
    %23 = vector.shape_cast %22 : vector<1x128x128xbf16> to vector<128x128xbf16>
    %cst_23 = arith.constant dense<0.000000e+00> : vector<40x128xf32>
    %24 = tpu.matmul %21, %23, %cst_23 {dimension_numbers = #tpu.dot_dimension_numbers<[1], [0], [0], [1], [0, 0, 1, 1], [], []>} : vector<40x128xbf16>, vector<128x128xbf16>, vector<40x128xf32> -> vector<40x128xf32>
    %25 = arith.addf %19, %24 : vector<40x128xf32>
    %c2 = arith.constant 2 : index
    %c0_24 = arith.constant 0 : index
    %26 = vector.load %arg7[%c2, %c0_24] : memref<56x128xf32, #tpu.memory_space<vmem>>, vector<40x128xf32>
    %27 = arith.truncf %26 : vector<40x128xf32> to vector<40x128xbf16>
    %c2_25 = arith.constant 2 : index
    %c0_26 = arith.constant 0 : index
    %c0_27 = arith.constant 0 : index
    %28 = vector.load %arg4[%c2_25, %c0_26, %c0_27] : memref<9x128x128xbf16, #tpu.memory_space<vmem>>, vector<1x128x128xbf16>
    %29 = vector.shape_cast %28 : vector<1x128x128xbf16> to vector<128x128xbf16>
    %cst_28 = arith.constant dense<0.000000e+00> : vector<40x128xf32>
    %30 = tpu.matmul %27, %29, %cst_28 {dimension_numbers = #tpu.dot_dimension_numbers<[1], [0], [0], [1], [0, 0, 1, 1], [], []>} : vector<40x128xbf16>, vector<128x128xbf16>, vector<40x128xf32> -> vector<40x128xf32>
    %31 = arith.addf %25, %30 : vector<40x128xf32>
    %c7 = arith.constant 7 : index
    %c0_29 = arith.constant 0 : index
    %32 = vector.load %arg7[%c7, %c0_29] : memref<56x128xf32, #tpu.memory_space<vmem>>, vector<40x128xf32>
    %33 = arith.truncf %32 : vector<40x128xf32> to vector<40x128xbf16>
    %c3 = arith.constant 3 : index
    %c0_30 = arith.constant 0 : index
    %c0_31 = arith.constant 0 : index
    %34 = vector.load %arg4[%c3, %c0_30, %c0_31] : memref<9x128x128xbf16, #tpu.memory_space<vmem>>, vector<1x128x128xbf16>
    %35 = vector.shape_cast %34 : vector<1x128x128xbf16> to vector<128x128xbf16>
    %cst_32 = arith.constant dense<0.000000e+00> : vector<40x128xf32>
    %36 = tpu.matmul %33, %35, %cst_32 {dimension_numbers = #tpu.dot_dimension_numbers<[1], [0], [0], [1], [0, 0, 1, 1], [], []>} : vector<40x128xbf16>, vector<128x128xbf16>, vector<40x128xf32> -> vector<40x128xf32>
    %37 = arith.addf %31, %36 : vector<40x128xf32>
    %c8 = arith.constant 8 : index
    %c0_33 = arith.constant 0 : index
    %38 = vector.load %arg7[%c8, %c0_33] : memref<56x128xf32, #tpu.memory_space<vmem>>, vector<40x128xf32>
    %39 = arith.truncf %38 : vector<40x128xf32> to vector<40x128xbf16>
    %c4 = arith.constant 4 : index
    %c0_34 = arith.constant 0 : index
    %c0_35 = arith.constant 0 : index
    %40 = vector.load %arg4[%c4, %c0_34, %c0_35] : memref<9x128x128xbf16, #tpu.memory_space<vmem>>, vector<1x128x128xbf16>
    %41 = vector.shape_cast %40 : vector<1x128x128xbf16> to vector<128x128xbf16>
    %cst_36 = arith.constant dense<0.000000e+00> : vector<40x128xf32>
    %42 = tpu.matmul %39, %41, %cst_36 {dimension_numbers = #tpu.dot_dimension_numbers<[1], [0], [0], [1], [0, 0, 1, 1], [], []>} : vector<40x128xbf16>, vector<128x128xbf16>, vector<40x128xf32> -> vector<40x128xf32>
    %43 = arith.addf %37, %42 : vector<40x128xf32>
    %c9 = arith.constant 9 : index
    %c0_37 = arith.constant 0 : index
    %44 = vector.load %arg7[%c9, %c0_37] : memref<56x128xf32, #tpu.memory_space<vmem>>, vector<40x128xf32>
    %45 = arith.truncf %44 : vector<40x128xf32> to vector<40x128xbf16>
    %c5 = arith.constant 5 : index
    %c0_38 = arith.constant 0 : index
    %c0_39 = arith.constant 0 : index
    %46 = vector.load %arg4[%c5, %c0_38, %c0_39] : memref<9x128x128xbf16, #tpu.memory_space<vmem>>, vector<1x128x128xbf16>
    %47 = vector.shape_cast %46 : vector<1x128x128xbf16> to vector<128x128xbf16>
    %cst_40 = arith.constant dense<0.000000e+00> : vector<40x128xf32>
    %48 = tpu.matmul %45, %47, %cst_40 {dimension_numbers = #tpu.dot_dimension_numbers<[1], [0], [0], [1], [0, 0, 1, 1], [], []>} : vector<40x128xbf16>, vector<128x128xbf16>, vector<40x128xf32> -> vector<40x128xf32>
    %49 = arith.addf %43, %48 : vector<40x128xf32>
    %c14 = arith.constant 14 : index
    %c0_41 = arith.constant 0 : index
    %50 = vector.load %arg7[%c14, %c0_41] : memref<56x128xf32, #tpu.memory_space<vmem>>, vector<40x128xf32>
    %51 = arith.truncf %50 : vector<40x128xf32> to vector<40x128xbf16>
    %c6 = arith.constant 6 : index
    %c0_42 = arith.constant 0 : index
    %c0_43 = arith.constant 0 : index
    %52 = vector.load %arg4[%c6, %c0_42, %c0_43] : memref<9x128x128xbf16, #tpu.memory_space<vmem>>, vector<1x128x128xbf16>
    %53 = vector.shape_cast %52 : vector<1x128x128xbf16> to vector<128x128xbf16>
    %cst_44 = arith.constant dense<0.000000e+00> : vector<40x128xf32>
    %54 = tpu.matmul %51, %53, %cst_44 {dimension_numbers = #tpu.dot_dimension_numbers<[1], [0], [0], [1], [0, 0, 1, 1], [], []>} : vector<40x128xbf16>, vector<128x128xbf16>, vector<40x128xf32> -> vector<40x128xf32>
    %55 = arith.addf %49, %54 : vector<40x128xf32>
    %c15 = arith.constant 15 : index
    %c0_45 = arith.constant 0 : index
    %56 = vector.load %arg7[%c15, %c0_45] : memref<56x128xf32, #tpu.memory_space<vmem>>, vector<40x128xf32>
    %57 = arith.truncf %56 : vector<40x128xf32> to vector<40x128xbf16>
    %c7_46 = arith.constant 7 : index
    %c0_47 = arith.constant 0 : index
    %c0_48 = arith.constant 0 : index
    %58 = vector.load %arg4[%c7_46, %c0_47, %c0_48] : memref<9x128x128xbf16, #tpu.memory_space<vmem>>, vector<1x128x128xbf16>
    %59 = vector.shape_cast %58 : vector<1x128x128xbf16> to vector<128x128xbf16>
    %cst_49 = arith.constant dense<0.000000e+00> : vector<40x128xf32>
    %60 = tpu.matmul %57, %59, %cst_49 {dimension_numbers = #tpu.dot_dimension_numbers<[1], [0], [0], [1], [0, 0, 1, 1], [], []>} : vector<40x128xbf16>, vector<128x128xbf16>, vector<40x128xf32> -> vector<40x128xf32>
    %61 = arith.addf %55, %60 : vector<40x128xf32>
    %c16 = arith.constant 16 : index
    %c0_50 = arith.constant 0 : index
    %62 = vector.load %arg7[%c16, %c0_50] : memref<56x128xf32, #tpu.memory_space<vmem>>, vector<40x128xf32>
    %63 = arith.truncf %62 : vector<40x128xf32> to vector<40x128xbf16>
    %c8_51 = arith.constant 8 : index
    %c0_52 = arith.constant 0 : index
    %c0_53 = arith.constant 0 : index
    %64 = vector.load %arg4[%c8_51, %c0_52, %c0_53] : memref<9x128x128xbf16, #tpu.memory_space<vmem>>, vector<1x128x128xbf16>
    %65 = vector.shape_cast %64 : vector<1x128x128xbf16> to vector<128x128xbf16>
    %cst_54 = arith.constant dense<0.000000e+00> : vector<40x128xf32>
    %66 = tpu.matmul %63, %65, %cst_54 {dimension_numbers = #tpu.dot_dimension_numbers<[1], [0], [0], [1], [0, 0, 1, 1], [], []>} : vector<40x128xbf16>, vector<128x128xbf16>, vector<40x128xf32> -> vector<40x128xf32>
    %67 = arith.addf %61, %66 : vector<40x128xf32>
    %c0_55 = arith.constant 0 : index
    %c0_56 = arith.constant 0 : index
    %68 = vector.load %arg5[%c0_55, %c0_56] : memref<1x128xf32, #tpu.memory_space<vmem>>, vector<1x128xf32>
    %69 = vector.broadcast %68 : vector<1x128xf32> to vector<40x128xf32>
    %70 = arith.addf %67, %69 : vector<40x128xf32>
    %cst_57 = arith.constant 0.000000e+00 : f32
    %71 = vector.broadcast %cst_57 : f32 to vector<40x128xf32>
    %72 = arith.maximumf %70, %71 : vector<40x128xf32>
    %73 = vector.extract_strided_slice %72 {offsets = [0, 0], sizes = [5, 32], strides = [1, 1]} : vector<40x128xf32> to vector<5x32xf32>
    %c0_58 = arith.constant 0 : index
    %c0_59 = arith.constant 0 : index
    %c0_60 = arith.constant 0 : index
    %c0_61 = arith.constant 0 : index
    %74 = vector.load %arg6[%c0_58, %c0_59, %c0_60, %c0_61] : memref<1x5x5x32xf32, #tpu.memory_space<vmem>>, vector<1x1x5x32xf32>
    %75 = vector.shape_cast %74 : vector<1x1x5x32xf32> to vector<5x32xf32>
    %76 = vector.shape_cast %73 : vector<5x32xf32> to vector<1x1x5x32xf32>
    tpu.vector_store %arg6[%c0_58, %c0_59, %c0_60, %c0_61], %76 {strides = array<i32>} : memref<1x5x5x32xf32, #tpu.memory_space<vmem>>, vector<1x1x5x32xf32>,
    %77 = vector.extract_strided_slice %72 {offsets = [7, 0], sizes = [5, 32], strides = [1, 1]} : vector<40x128xf32> to vector<5x32xf32>
    %c0_62 = arith.constant 0 : index
    %c1_63 = arith.constant 1 : index
    %c0_64 = arith.constant 0 : index
    %c0_65 = arith.constant 0 : index
    %78 = vector.load %arg6[%c0_62, %c1_63, %c0_64, %c0_65] : memref<1x5x5x32xf32, #tpu.memory_space<vmem>>, vector<1x1x5x32xf32>
    %79 = vector.shape_cast %78 : vector<1x1x5x32xf32> to vector<5x32xf32>
    %80 = vector.shape_cast %77 : vector<5x32xf32> to vector<1x1x5x32xf32>
    tpu.vector_store %arg6[%c0_62, %c1_63, %c0_64, %c0_65], %80 {strides = array<i32>} : memref<1x5x5x32xf32, #tpu.memory_space<vmem>>, vector<1x1x5x32xf32>,
    %81 = vector.extract_strided_slice %72 {offsets = [14, 0], sizes = [5, 32], strides = [1, 1]} : vector<40x128xf32> to vector<5x32xf32>
    %c0_66 = arith.constant 0 : index
    %c2_67 = arith.constant 2 : index
    %c0_68 = arith.constant 0 : index
    %c0_69 = arith.constant 0 : index
    %82 = vector.load %arg6[%c0_66, %c2_67, %c0_68, %c0_69] : memref<1x5x5x32xf32, #tpu.memory_space<vmem>>, vector<1x1x5x32xf32>
    %83 = vector.shape_cast %82 : vector<1x1x5x32xf32> to vector<5x32xf32>
    %84 = vector.shape_cast %81 : vector<5x32xf32> to vector<1x1x5x32xf32>
    tpu.vector_store %arg6[%c0_66, %c2_67, %c0_68, %c0_69], %84 {strides = array<i32>} : memref<1x5x5x32xf32, #tpu.memory_space<vmem>>, vector<1x1x5x32xf32>,
    %85 = vector.extract_strided_slice %72 {offsets = [21, 0], sizes = [5, 32], strides = [1, 1]} : vector<40x128xf32> to vector<5x32xf32>
    %c0_70 = arith.constant 0 : index
    %c3_71 = arith.constant 3 : index
    %c0_72 = arith.constant 0 : index
    %c0_73 = arith.constant 0 : index
    %86 = vector.load %arg6[%c0_70, %c3_71, %c0_72, %c0_73] : memref<1x5x5x32xf32, #tpu.memory_space<vmem>>, vector<1x1x5x32xf32>
    %87 = vector.shape_cast %86 : vector<1x1x5x32xf32> to vector<5x32xf32>
    %88 = vector.shape_cast %85 : vector<5x32xf32> to vector<1x1x5x32xf32>
    tpu.vector_store %arg6[%c0_70, %c3_71, %c0_72, %c0_73], %88 {strides = array<i32>} : memref<1x5x5x32xf32, #tpu.memory_space<vmem>>, vector<1x1x5x32xf32>,
    %89 = vector.extract_strided_slice %72 {offsets = [28, 0], sizes = [5, 32], strides = [1, 1]} : vector<40x128xf32> to vector<5x32xf32>
    %c0_74 = arith.constant 0 : index
    %c4_75 = arith.constant 4 : index
    %c0_76 = arith.constant 0 : index
    %c0_77 = arith.constant 0 : index
    %90 = vector.load %arg6[%c0_74, %c4_75, %c0_76, %c0_77] : memref<1x5x5x32xf32, #tpu.memory_space<vmem>>, vector<1x1x5x32xf32>
    %91 = vector.shape_cast %90 : vector<1x1x5x32xf32> to vector<5x32xf32>
    %92 = vector.shape_cast %89 : vector<5x32xf32> to vector<1x1x5x32xf32>
    tpu.vector_store %arg6[%c0_74, %c4_75, %c0_76, %c0_77], %92 {strides = array<i32>} : memref<1x5x5x32xf32, #tpu.memory_space<vmem>>, vector<1x1x5x32xf32>,
    return
  }
  func.func @transform_0(%arg0: i32) -> (i32, i32, i32) {
    %c0_i32 = arith.constant 0 : i32
    %c0_i32_0 = arith.constant 0 : i32
    %c0_i32_1 = arith.constant 0 : i32
    return %arg0, %c0_i32, %c0_i32_0 : i32, i32, i32
  }
  func.func @transform_1(%arg0: i32) -> (i32, i32) {
    %c0_i32 = arith.constant 0 : i32
    %c0_i32_0 = arith.constant 0 : i32
    %c0_i32_1 = arith.constant 0 : i32
    return %c0_i32, %c0_i32_0 : i32, i32
  }
  func.func @transform_2(%arg0: i32) -> (i32, i32, i32) {
    %c0_i32 = arith.constant 0 : i32
    %c0_i32_0 = arith.constant 0 : i32
    %c0_i32_1 = arith.constant 0 : i32
    return %arg0, %c0_i32, %c0_i32_0 : i32, i32, i32
  }
  func.func @transform_3(%arg0: i32) -> (i32, i32, i32) {
    %c0_i32 = arith.constant 0 : i32
    %c0_i32_0 = arith.constant 0 : i32
    %c0_i32_1 = arith.constant 0 : i32
    %c0_i32_2 = arith.constant 0 : i32
    return %c0_i32, %c0_i32_0, %c0_i32_1 : i32, i32, i32
  }
  func.func @transform_4(%arg0: i32) -> (i32, i32) {
    %c0_i32 = arith.constant 0 : i32
    %c0_i32_0 = arith.constant 0 : i32
    %c0_i32_1 = arith.constant 0 : i32
    return %c0_i32, %c0_i32_0 : i32, i32
  }
  func.func @transform_5(%arg0: i32) -> (i32, i32, i32, i32) {
    %c0_i32 = arith.constant 0 : i32
    %c0_i32_0 = arith.constant 0 : i32
    %c0_i32_1 = arith.constant 0 : i32
    %c0_i32_2 = arith.constant 0 : i32
    return %arg0, %c0_i32, %c0_i32_0, %c0_i32_1 : i32, i32, i32, i32
  }
}

</mosaic_0001>

<bundles_post_ra>
// kernel: _lambda_.1
= control target key start
LH: loop header
LB: loop body
LE: loop exit
PB: predicated region body
PF: predicated region fallthrough
CT: control target
= control target key end

     0   :  { %s2471_s18 = smov 0   ;;  %s2958_s0 = inlined_call_operand.vmem [shape: bf16[2,49,128], index: 0, kind: input, shape index: {}]   ;;  %s2959_s1 = inlined_call_operand.vmem [shape: bf16[128,128], index: 1, kind: input, shape index: {}]   ;;  %s2960_s2 = inlined_call_operand.vmem [shape: f32[2,1,128], index: 2, kind: input, shape index: {}]   ;;  %s2961_s3 = inlined_call_operand.vmem [shape: bf16[9,128,128], index: 3, kind: input, shape index: {}]   ;;  %s2962_s4 = inlined_call_operand.vmem [shape: f32[1,128], index: 4, kind: input, shape index: {}]   ;;  %s2963_s5 = inlined_call_operand.vmem [shape: f32[2,5,5,32], index: 5, kind: output, shape index: {}]  }
   0x1 LB: > { %s1717_s19 = sadd.s32 4294967295, %s2437_s18   ;;  %p1721_p0 = scmp.ge.s32.totalorder %s2437_s18, 1  ;;  %s2437_s18 = sphi %s2471_s18, %s15_s18  }
   0x2   : > { %p195_p1 = scmp.lt.s32.totalorder %s2437_s18, 3 }
   0x4   : > { %p196_p2 = pnand %p1721_p0, %p195_p1 }
   0x5   : > { %v2347_v0 = vld [vmem:[%s2959_s1] sm:$0xff] (!%p196_p2)   ;;  %p226_p3 = scmp.lt.s32.totalorder (!%p196_p2), %s1717_s19, 1  ;;  %v2348_v1 = vld [vmem:[%s2959_s1 + $0x8] sm:$0xff] (!%p196_p2)   ;;  %v2439_v2 = vmov (!%p196_p2), 0.0   ;;  %v2349_v3 = vld [vmem:[%s2959_s1 + $0x10] sm:$0xff] (!%p196_p2)   ;;  %vm2440_vm0 = vmmov (!%p196_p2), 0  }
   0x6   : > { %199 = sbr.rel (%p196_p2) target bundleno = 630 (0x276), region = 40  ;;  %2059 = vmatprep.subr.bf16.mxu0 (!%p196_p2), %v2347_v0  ;;  %2083 = vmatprep.subr.bf16.mxu1 (!%p196_p2), %v2439_v2  ;;  %418 = vst [vmem:[#allocation2 + $0x31] sm:$0x7f] (!%p196_p2), %v2439_v2  ;;  %v2350_v4 = vld [vmem:[%s2959_s1 + $0x18] sm:$0xff] (!%p196_p2)   ;;  %v2351_v6 = vld [vmem:[%s2959_s1 + $0x20] sm:$0xff] (!%p196_p2)   ;;  %v2361_v8 = vld [vmem:[%s2961_s3 + $0x48] sm:$0xff] (!%p196_p2)  }
   0x7   : > { %2060 = vmatpush3.bf16.msra.mxu0 (!%p196_p2), %v2347_v0  ;;  %v2359_v7 = vld [vmem:[%s2961_s3 + $0x40] sm:$0xff] (!%p196_p2)   ;;  %v2352_v9 = vld [vmem:[%s2959_s1 + $0x28] sm:$0xff] (!%p196_p2)   ;;  %v2363_v10 = vld [vmem:[%s2961_s3 + $0x50] sm:$0xff] (!%p196_p2)   ;;  %2099 = vmatprep.mubr.msk.bf16.mxu1 (!%p196_p2), %vm2440_vm0, %v2439_v2  ;;  %vm1631_vm1 = vcmask (!%p196_p2), 258048   ;;  %vm1634_vm2 = vcmask (!%p196_p2), 261127   ;;  %vm1636_vm3 = vcmask (!%p196_p2), 257024  }
   0x8   : > { %2061 = vmatprep.subr.bf16.mxu0 (!%p196_p2), %v2348_v1  ;;  %2084 = vmatpush3.bf16.msra.mxu1 (!%p196_p2), %v2359_v7  ;;  %v2353_v11 = vld [vmem:[%s2959_s1 + $0x30] sm:$0xff] (!%p196_p2)   ;;  %v2365_v12 = vld [vmem:[%s2961_s3 + $0x58] sm:$0xff] (!%p196_p2)   ;;  %v2360_v16 = vld [vmem:[%s2961_s3] sm:$0xff] (!%p196_p2)   ;;  %vm1639_vm4 = vcmask (!%p196_p2), 261126   ;;  %vm1641_vm5 = vcmask (!%p196_p2), 256000   ;;  %vm1644_vm6 = vcmask (!%p196_p2), 261125  }
   0x9   : > { %2085 = vmatprep.subr.bf16.mxu1 (!%p196_p2), %v2439_v2  ;;  %v2354_v13 = vld [vmem:[%s2959_s1 + $0x38] sm:$0xff] (!%p196_p2)   ;;  %v2362_v17 = vld [vmem:[%s2961_s3 + $0x8] sm:$0xff] (!%p196_p2)   ;;  %v2364_v19 = vld [vmem:[%s2961_s3 + $0x10] sm:$0xff] (!%p196_p2)   ;;  %vm1646_vm7 = vcmask (!%p196_p2), 254976   ;;  %vm1649_vm8 = vcmask (!%p196_p2), 261124   ;;  %vm1651_vm9 = vcmask (!%p196_p2), 253952  }
   0xa   : > { %v2366_v20 = vld [vmem:[%s2961_s3 + $0x18] sm:$0xff] (!%p196_p2)   ;;  %v2368_v21 = vld [vmem:[%s2961_s3 + $0x20] sm:$0xff] (!%p196_p2)   ;;  %v2370_v22 = vld [vmem:[%s2961_s3 + $0x28] sm:$0xff] (!%p196_p2)  }
   0xb   : > { %2062 = vmatpush3.bf16.msra.mxu0 (!%p196_p2), %v2348_v1  ;;  %v2367_v23 = vld [vmem:[%s2961_s3 + $0x60] sm:$0xff] (!%p196_p2)   ;;  %v2372_v24 = vld [vmem:[%s2961_s3 + $0x30] sm:$0xff] (!%p196_p2)   ;;  %v2369_v25 = vld [vmem:[%s2961_s3 + $0x68] sm:$0xff] (!%p196_p2)  }
   0xc   : > { %2063 = vmatprep.subr.bf16.mxu0 (!%p196_p2), %v2349_v3  ;;  %2086 = vmatpush3.bf16.msra.mxu1 (!%p196_p2), %v2361_v8  ;;  %v2374_v26 = vld [vmem:[%s2961_s3 + $0x38] sm:$0xff] (!%p196_p2)   ;;  %v2371_v27 = vld [vmem:[%s2961_s3 + $0x70] sm:$0xff] (!%p196_p2)   ;;  %v2376_v42 = vld [vmem:[%s2961_s3 + $0xc0] sm:$0xff] (!%p196_p2)  }
   0xd   : > { %s2965_s19 = smov (!%p226_p3, %s1717_s19), 1  ;;  %2087 = vmatprep.subr.bf16.mxu1 %v2439_v2  ;;  %v2373_v28 = vld [vmem:[%s2961_s3 + $0x78] sm:$0xff]   ;;  %v2378_v53 = vld [vmem:[%s2961_s3 + $0xc8] sm:$0xff]   ;;  %v2375_v60 = vld [vmem:[%s2961_s3 + $0x80] sm:$0xff]  }
   0xe   : > { %s2335_s26 = smul.u32 28, %s2965_s19  ;;  %s233_s28 = scalar_lea.vmem %s2960_s2, %s2965_s19  ;;  %v2380_v62 = vld [vmem:[%s2961_s3 + $0xd0] sm:$0xff]   ;;  %v2377_v0 = vld [vmem:[%s2961_s3 + $0x88] sm:$0xff]   ;;  %v2382_v1 = vld [vmem:[%s2961_s3 + $0xd8] sm:$0xff]  }
   0xf   : > { %2064 = vmatpush3.bf16.msra.mxu0 %v2349_v3  ;;  %v1724_v29 = vld [vmem:[%s233_s28] ss:$0 sm:$0xff] }
  0x10   : > { %s2496_s29 = scalar_lea.vmem %s2958_s0, %s2335_s26  ;;  %2065 = vmatprep.subr.bf16.mxu0 %v2350_v4  ;;  %2088 = vmatpush3.bf16.msra.mxu1 %v2363_v10  ;;  %v2384_v8 = vld [vmem:[%s2961_s3 + $0xe0] sm:$0xff]   ;;  %v2386_v10 = vld [vmem:[%s2961_s3 + $0xe8] sm:$0xff]   ;;  %s2336_s26 = smul.u32 40, %s2965_s19 }
  0x11   : > { %v2355_v5 = vld [vmem:[%s2496_s29] sm:$0xff]   ;;  %2089 = vmatprep.subr.bf16.mxu1 %v2439_v2  ;;  %v2356_v14 = vld [vmem:[%s2496_s29 + $0x8] sm:$0xff]   ;;  %v2357_v15 = vld [vmem:[%s2496_s29 + $0x10] sm:$0xff]  }
  0x12   : > { %2075 = vmatprep.mubr.bf16.mxu0 %v2355_v5  ;;  %v2358_v18 = vld [vmem:[%s2496_s29 + $0x18] ss:$0 sps:$4 sm:$0x11]   ;;  %s2944_s7 = scalar_lea.vmem %s2963_s5, %s2336_s26 }
  0x13   : > { %2066 = vmatpush3.bf16.msra.mxu0 %v2350_v4 }
  0x14   : > { %2067 = vmatprep.subr.bf16.mxu0 %v2351_v6  ;;  %2090 = vmatpush3.bf16.msra.mxu1 %v2365_v12 }
  0x15   : > { %2091 = vmatprep.subr.bf16.mxu1 %v2439_v2 }
  0x17   : > { %2068 = vmatpush3.bf16.msra.mxu0 %v2351_v6  ;;  %v2379_v6 = vld [vmem:[%s2961_s3 + $0x90] sm:$0xff]  }
  0x18   : > { %2069 = vmatprep.subr.bf16.mxu0 %v2352_v9  ;;  %2092 = vmatpush3.bf16.msra.mxu1 %v2367_v23  ;;  %v2394_v23 = vld [vmem:[%s2961_s3 + $0x148] sm:$0xff]  }
  0x19   : > { %2093 = vmatprep.subr.bf16.mxu1 %v2439_v2 }
  0x1b   : > { %2070 = vmatpush3.bf16.msra.mxu0 %v2352_v9  ;;  %v2381_v9 = vld [vmem:[%s2961_s3 + $0x98] sm:$0xff]  }
  0x1c   : > { %2071 = vmatprep.subr.bf16.mxu0 %v2353_v11  ;;  %2094 = vmatpush3.bf16.msra.mxu1 %v2369_v25 }
  0x1d   : > { %2095 = vmatprep.subr.bf16.mxu1 %v2439_v2 }
  0x1f   : > { %2072 = vmatpush3.bf16.msra.mxu0 %v2353_v11 }
  0x20   : > { %2073 = vmatprep.subr.bf16.mxu0 %v2354_v13  ;;  %2096 = vmatpush3.bf16.msra.mxu1 %v2371_v27 }
  0x21   : > { %2097 = vmatprep.subr.bf16.mxu1 %v2439_v2 }
  0x23   : > { %2074 = vmatpush3.bf16.msra.mxu0 %v2354_v13  ;;  %v2383_v13 = vld [vmem:[%s2961_s3 + $0xa0] sm:$0xff]  }
  0x24   : > { %2111 = vmatprep.subr.bf16.mxu0 %v2439_v2  ;;  %2098 = vmatpush3.bf16.msra.mxu1 %v2373_v28 }
  0x25   : > { %2139 = vmatprep.subr.bf16.mxu1 %v2439_v2 }
  0x26   : > { %2076 = vmatmul.mubr.bf16.vlgmr.msra.gmra.mrb[0].mxu0 %v2356_v14  ;;  %v2388_v14 = vld [vmem:[%s2961_s3 + $0xf0] sm:$0xff]  }
  0x27   : > { %2079 = vmatprep.mubr.bf16.mxu0 %v2357_v15  ;;  %2112 = vmatpush3.bf16.msra.mxu0 %v2360_v16  ;;  %v2385_v15 = vld [vmem:[%s2961_s3 + $0xa8] sm:$0xff]   ;;  %v2390_v16 = vld [vmem:[%s2961_s3 + $0xf8] sm:$0xff]  }
  0x28   : > { %2113 = vmatprep.subr.bf16.mxu0 %v2439_v2 }
  0x2b   : > { %2114 = vmatpush3.bf16.msra.mxu0 %v2362_v17 }
  0x2c   : > { %2115 = vmatprep.subr.bf16.mxu0 %v2439_v2 }
  0x2e   : > { %2080 = vmatmul.mubr.bf16.gmra.mrb[4].mxu0 %v2358_v18 }
  0x2f   : > { %2116 = vmatpush3.bf16.msra.mxu0 %v2364_v19  ;;  %2127 = vmatprep.mubr.msk.bf16.mxu0 %vm2440_vm0, %v2439_v2  ;;  %v2387_v19 = vld [vmem:[%s2961_s3 + $0xb0] sm:$0xff]  }
  0x30   : > { %2117 = vmatprep.subr.bf16.mxu0 %v2439_v2 }
  0x33   : > { %2118 = vmatpush3.bf16.msra.mxu0 %v2366_v20  ;;  %v2392_v20 = vld [vmem:[%s2961_s3 + $0x140] sm:$0xff]  }
  0x34   : > { %2119 = vmatprep.subr.bf16.mxu0 %v2439_v2 }
  0x37   : > { %2120 = vmatpush3.bf16.msra.mxu0 %v2368_v21 }
  0x38   : > { %2121 = vmatprep.subr.bf16.mxu0 %v2439_v2 }
  0x3b   : > { %2122 = vmatpush3.bf16.msra.mxu0 %v2370_v22  ;;  %v2389_v22 = vld [vmem:[%s2961_s3 + $0xb8] sm:$0xff]  }
  0x3c   : > { %2123 = vmatprep.subr.bf16.mxu0 %v2439_v2 }
  0x3f   : > { %2124 = vmatpush3.bf16.msra.mxu0 %v2372_v24 }
  0x40   : > { %2125 = vmatprep.subr.bf16.mxu0 %v2439_v2 }
  0x43   : > { %2126 = vmatpush3.bf16.msra.mxu0 %v2374_v26  ;;  %v2391_v26 = vld [vmem:[%s2961_s3 + $0x100] sm:$0xff]  }
  0x44   : > { %2167 = vmatprep.subr.bf16.mxu0 %v2439_v2 }
  0xf9   : > { %v2077_v30 = vpop.f32.mrb[0].mxu0 }
  0xfa   : > { %v383_v31 = vadd.f32 %v2077_v30, %v1724_v29  ;;  %v374_v32 = vpop.f32.mrb[1].mxu0  ;;  %v2396_v30 = vld [vmem:[%s2961_s3 + $0x150] sm:$0xff]  }
  0xfb   : > { %v375_v33 = vadd.f32 %v1724_v29, %v374_v32  ;;  %v2078_v34 = vpop.f32.mrb[2].mxu0  ;;  %v2393_v32 = vld [vmem:[%s2961_s3 + $0x108] sm:$0xff]  }
  0xfc   : > { %v2590_v35 = vmax.f32 %v383_v31, 0.0  ;;  %v386_v36 = vadd.f32 %v2078_v34, %v1724_v29  ;;  %v377_v37 = vpop.f32.mrb[3].mxu0  ;;  %v2398_v34 = vld [vmem:[%s2961_s3 + $0x158] sm:$0xff]  }
  0xfd   : > { %v404_v38 = vmax.f32 %v375_v33, 0.0  ;;  %v378_v39 = vadd.f32 %v1724_v29, %v377_v37  ;;  %v2395_v37 = vld [vmem:[%s2961_s3 + $0x110] sm:$0xff]  }
  0xfe   : > { %413 = vst [vmem:[#allocation2 + $0x10] sm:$0xff] %v2590_v35  ;;  %v2593_v40 = vmax.f32 %v386_v36, 0.0 }
  0xff   : > { %411 = vst [vmem:[#allocation2] sm:$0xff] %v404_v38  ;;  %v2595_v41 = vmax.f32 %v378_v39, 0.0 }
 0x100   : > { %414 = vst [vmem:[#allocation2 + $0x18] sm:$0xff] %v2593_v40  ;;  %v2603_v43 = vpack.c.bf16 %v2593_v40, %v2590_v35 }
 0x101   : > { %412 = vst [vmem:[#allocation2 + $0x8] sm:$0xff] %v2595_v41  ;;  %v2081_v44 = vpop.f32.mrb[4].mxu0  ;;  %v424_v45 = vpack.c.bf16 %v2595_v41, %v404_v38  ;;  %v949_v46 = vpack.c.bf16 %v2590_v35, %v2595_v41  ;;  %v2414_v35 = vld [vmem:[%s2961_s3 + $0x1d8] sm:$0xff]   ;;  %v2411_v41 = vld [vmem:[%s2961_s3 + $0x190] sm:$0xff]  }
 0x102   : > { %v399_v47 = vadd.f32 %v2081_v44, %v1724_v29  ;;  %v390_v48 = vpop.f32.mrb[5].mxu0 }
 0x103   : > { %v391_v49 = vadd.f32 %v1724_v29, %v390_v48  ;;  %v2082_v50 = vpop.f32.mrb[6].mxu0  ;;  %2128 = vmatmul.mubr.bf16.vlgmr.msra.gmra.mrb[8].mxu0 %v424_v45  ;;  %v2397_v45 = vld [vmem:[%s2961_s3 + $0x118] sm:$0xff]   ;;  %v2402_v48 = vld [vmem:[%s2961_s3 + $0x168] sm:$0xff]  }
 0x104   : > { %v410_v51 = vmax.f32 %v399_v47, 0.0  ;;  %v393_v52 = vpop.f32.mrb[7].mxu0  ;;  %2168 = vmatpush3.bf16.msra.mxu0 %v2376_v42  ;;  %2131 = vmatprep.mubr.msk.bf16.mxu0 %vm2440_vm0, %v2439_v2  ;;  %v2400_v42 = vld [vmem:[%s2961_s3 + $0x160] sm:$0xff]  }
 0x105   : > { %v2614_v54 = vmax.f32 %v391_v49, 0.0  ;;  %v394_v55 = vadd.f32 %v1724_v29, %v393_v52  ;;  %2169 = vmatprep.subr.bf16.mxu0 %v2439_v2  ;;  %v2399_v49 = vld [vmem:[%s2961_s3 + $0x120] sm:$0xff]   ;;  %v2401_v52 = vld [vmem:[%s2961_s3 + $0x128] sm:$0xff]  }
 0x106   : > { %417 = vst [vmem:[#allocation2 + $0x30] sm:$0x1] %v410_v51  ;;  %v2404_v51 = vld [vmem:[%s2961_s3 + $0x170] sm:$0xff]  }
 0x107   : > { %415 = vst [vmem:[#allocation2 + $0x20] sm:$0xff] %v2614_v54  ;;  %v2618_v56 = vmax.f32 %v394_v55, 0.0  ;;  %v950_v57 = vpack.c.bf16 %v2614_v54, %v2593_v40  ;;  %v426_v4 = vpack.c.bf16 %v2614_v54, %v2614_v54  ;;  %v2652_v5 = vld [vmem:[#allocation2 + $0x11] sm:$0xff]  ;;  %v2418_v40 = vld [vmem:[%s2961_s3 + $0x1e8] sm:$0xff]  }
 0x108   : > { %v443_v58 = vld [vmem:[#allocation2 + $0x1] sm:$0xff]  ;;  %v2622_v59 = vld [vmem:[#allocation2 + $0x9] sm:$0xff]  ;;  %2170 = vmatpush3.bf16.msra.mxu0 %v2378_v53  ;;  %v2725_v29 = vld [vmem:[#allocation2 + $0x17] sm:$0xff] }
 0x109   : > { %416 = vst [vmem:[#allocation2 + $0x28] sm:$0xff] %v2618_v56  ;;  %v448_v61 = vpack.c.bf16 %v2622_v59, %v443_v58  ;;  %2171 = vmatprep.subr.bf16.mxu0 %v2439_v2  ;;  %v1486_v63 = vpack.c.bf16 %v2618_v56, %v2614_v54  ;;  %v810_v17 = vld [vmem:[#allocation2 + $0x7] sm:$0xff]  ;;  %v2698_v18 = vld [vmem:[#allocation2 + $0xf] sm:$0xff]  ;;  %v2406_v53 = vld [vmem:[%s2961_s3 + $0x178] sm:$0xff]  }
 0x10a   : > { %v815_v21 = vpack.c.bf16 %v2698_v18, %v810_v17  ;;  %v676_v24 = vld [vmem:[#allocation2 + $0x2] sm:$0xff]  ;;  %v677_v25 = vld [vmem:[#allocation2 + $0xa] sm:$0xff]  ;;  %v678_v36 = vld [vmem:[#allocation2 + $0x12] sm:$0xff] }
 0x10b   : > { %2100 = vmatmul.mubr.bf16.vlgmr.msra.gmra.mrb[0].mxu1 %v448_v61  ;;  %2132 = vmatmul.mubr.bf16.gmra.mrb[12].mxu0 %v2603_v43  ;;  %v681_v28 = vpack.c.bf16 %v677_v25, %v676_v24  ;;  %v2403_v55 = vld [vmem:[%s2961_s3 + $0x130] sm:$0xff]   ;;  %v2408_v58 = vld [vmem:[%s2961_s3 + $0x1c0] sm:$0xff]   ;;  %v2405_v61 = vld [vmem:[%s2961_s3 + $0x138] sm:$0xff]  }
 0x10c   : > { %2140 = vmatpush3.bf16.msra.mxu1 %v2375_v60  ;;  %2103 = vmatprep.mubr.msk.bf16.mxu1 %vm2440_vm0, %v2439_v2  ;;  %v1083_v60 = vpack.c.bf16 %v2652_v5, %v2622_v59  ;;  %v2407_v59 = vld [vmem:[%s2961_s3 + $0x180] sm:$0xff]  }
 0x10d   : > { %2141 = vmatprep.subr.bf16.mxu1 %v2439_v2  ;;  %2172 = vmatpush3.bf16.msra.mxu0 %v2380_v62  ;;  %v2410_v62 = vld [vmem:[%s2961_s3 + $0x1c8] sm:$0xff]  }
 0x10e   : > { %v2645_v3 = vld [vmem:[#allocation2 + $0x19] sm:$0xff]  ;;  %2173 = vmatprep.subr.bf16.mxu0 %v2439_v2  ;;  %2135 = vmatprep.mubr.msk.bf16.mxu0 %vm2440_vm0, %v2439_v2 }
 0x10f   : > { %v449_v7 = vpack.c.bf16 %v2645_v3, %v2652_v5  ;;  %v2722_v27 = vld [vmem:[#allocation2 + $0x1f] sm:$0xff] }
 0x110   : > { %2142 = vmatpush3.bf16.msra.mxu1 %v2377_v0  ;;  %v2673_v11 = vld [vmem:[#allocation2 + $0x21] sm:$0xff]  ;;  %v816_v31 = vpack.c.bf16 %v2722_v27, %v2725_v29  ;;  %v2412_v0 = vld [vmem:[%s2961_s3 + $0x1d0] sm:$0xff]  }
 0x111   : > { %2143 = vmatprep.subr.bf16.mxu1 %v2439_v2  ;;  %2174 = vmatpush3.bf16.msra.mxu0 %v2382_v1  ;;  %v450_v12 = vpack.c.bf16 %v2673_v11, %v2673_v11  ;;  %v679_v33 = vld [vmem:[#allocation2 + $0x1a] sm:$0xff]  ;;  %v2749_v39 = vld [vmem:[#allocation2 + $0x27] sm:$0xff]  ;;  %v1084_v1 = vpack.c.bf16 %v2673_v11, %v2645_v3  ;;  %v2419_v11 = vld [vmem:[%s2961_s3 + $0x1b0] sm:$0xff]  }
 0x112   : > { %2175 = vmatprep.subr.bf16.mxu0 %v2439_v2  ;;  %v682_v38 = vpack.c.bf16 %v679_v33, %v678_v36  ;;  %v817_v44 = vpack.c.bf16 %v2749_v39, %v2749_v39  ;;  %v680_v47 = vld [vmem:[#allocation2 + $0x22] sm:$0xff]  ;;  %v1484_v33 = vld [vmem:[#allocation2 + $0x30] sm:$0xff] }
 0x113   : > { %2104 = vmatmul.mubr.bf16.gmra.mrb[4].mxu1 %v449_v7  ;;  %2136 = vmatmul.mubr.bf16.gmra.mrb[16].mxu0 %v426_v4  ;;  %v683_v50 = vpack.c.bf16 %v680_v47, %v680_v47  ;;  %v2409_v4 = vld [vmem:[%s2961_s3 + $0x188] sm:$0xff]   ;;  %v2416_v3 = vld [vmem:[%s2961_s3 + $0x1e0] sm:$0xff]   ;;  %v951_v7 = vpack.c.bf16 %v2618_v56, %v2618_v56 }
 0x114   : > { %2144 = vmatpush3.bf16.msra.mxu1 %v2379_v6  ;;  %2107 = vmatprep.mubr.msk.bf16.mxu1 %vm2440_vm0, %v2439_v2  ;;  %v2413_v6 = vld [vmem:[%s2961_s3 + $0x198] sm:$0xff]  }
 0x115   : > { %2145 = vmatprep.subr.bf16.mxu1 %v2439_v2  ;;  %2176 = vmatpush3.bf16.msra.mxu0 %v2384_v8  ;;  %v2420_v8 = vld [vmem:[%s2961_s3 + $0x1f0] sm:$0xff]  }
 0x116   : > { %2177 = vmatprep.subr.bf16.mxu0 %v2439_v2  ;;  %2183 = vmatprep.mubr.msk.bf16.mxu0 %vm2440_vm0, %v2439_v2 }
 0x118   : > { %2146 = vmatpush3.bf16.msra.mxu1 %v2381_v9  ;;  %v2417_v9 = vld [vmem:[%s2961_s3 + $0x1a8] sm:$0xff]  }
 0x119   : > { %2147 = vmatprep.subr.bf16.mxu1 %v2439_v2  ;;  %2178 = vmatpush3.bf16.msra.mxu0 %v2386_v10  ;;  %v2422_v10 = vld [vmem:[%s2961_s3 + $0x1f8] sm:$0xff]  }
 0x11a   : > { %2179 = vmatprep.subr.bf16.mxu0 %v2439_v2 }
 0x11b   : > { %2108 = vmatmul.mubr.bf16.gmra.mrb[8].mxu1 %v450_v12  ;;  %v1351_v12 = vpack.c.bf16 %v2725_v29, %v2698_v18  ;;  %v1352_v18 = vpack.c.bf16 %v2749_v39, %v2722_v27  ;;  %v1216_v27 = vld [vmem:[#allocation2 + $0x2e] sm:$0xff] }
 0x11c   : > { %2148 = vmatpush3.bf16.msra.mxu1 %v2383_v13  ;;  %2155 = vmatprep.mubr.msk.bf16.mxu1 %vm2440_vm0, %v2439_v2  ;;  %v2421_v13 = vld [vmem:[%s2961_s3 + $0x1b8] sm:$0xff]   ;;  %v1219_v29 = vpack.c.bf16 %v1216_v27, %v1216_v27 }
 0x11d   : > { %2149 = vmatprep.subr.bf16.mxu1 %v2439_v2  ;;  %2180 = vmatpush3.bf16.msra.mxu0 %v2388_v14  ;;  %v1212_v14 = vld [vmem:[#allocation2 + $0xe] sm:$0xff] }
 0x11e   : > { %2181 = vmatprep.subr.bf16.mxu0 %v2439_v2 }
 0x120   : > { %2150 = vmatpush3.bf16.msra.mxu1 %v2385_v15  ;;  %v1213_v15 = vld [vmem:[#allocation2 + $0x16] sm:$0xff] }
 0x121   : > { %2151 = vmatprep.subr.bf16.mxu1 %v2439_v2  ;;  %2182 = vmatpush3.bf16.msra.mxu0 %v2390_v16  ;;  %v2423_v16 = vld [vmem:[%s2961_s3 + $0x200] sm:$0xff]   ;;  %v1217_v17 = vpack.c.bf16 %v1213_v15, %v1212_v14 }
 0x122   : > { %2223 = vmatprep.subr.bf16.mxu0 %v2439_v2 }
 0x124   : > { %2152 = vmatpush3.bf16.msra.mxu1 %v2387_v19  ;;  %2184 = vmatmul.mubr.bf16.vlgmr.msra.gmra.mrb[20].mxu0 %v815_v21  ;;  %v2424_v19 = vld [vmem:[%s2961_s3 + $0x208] sm:$0xff]   ;;  %v1214_v21 = vld [vmem:[#allocation2 + $0x1e] sm:$0xff] }
 0x125   : > { %2153 = vmatprep.subr.bf16.mxu1 %v2439_v2  ;;  %2224 = vmatpush3.bf16.msra.mxu0 %v2392_v20  ;;  %v1215_v20 = vld [vmem:[#allocation2 + $0x26] sm:$0xff] }
 0x126   : > { %2225 = vmatprep.subr.bf16.mxu0 %v2439_v2  ;;  %2187 = vmatprep.mubr.msk.bf16.mxu0 %vm2440_vm0, %v2439_v2  ;;  %v1218_v24 = vpack.c.bf16 %v1215_v20, %v1214_v21 }
 0x128   : > { %2154 = vmatpush3.bf16.msra.mxu1 %v2389_v22  ;;  %v2425_v22 = vld [vmem:[%s2961_s3 + $0x210] sm:$0xff]  }
 0x129   : > { %2195 = vmatprep.subr.bf16.mxu1 %v2439_v2  ;;  %2226 = vmatpush3.bf16.msra.mxu0 %v2394_v23  ;;  %v1350_v23 = vld [vmem:[#allocation2 + $0x2f] sm:$0xff] }
 0x12a   : > { %2227 = vmatprep.subr.bf16.mxu0 %v2439_v2  ;;  %v1353_v25 = vpack.c.bf16 %v1350_v23, %v1350_v23 }
 0x12b   : > { %2156 = vmatmul.mubr.bf16.vlgmr.msra.gmra.mrb[12].mxu1 %v681_v28  ;;  %v2427_v28 = vld [vmem:[%s2961_s3 + $0x220] sm:$0xff]  }
 0x12c   : > { %2196 = vmatpush3.bf16.msra.mxu1 %v2391_v26  ;;  %2159 = vmatprep.mubr.msk.bf16.mxu1 %vm2440_vm0, %v2439_v2  ;;  %v2426_v26 = vld [vmem:[%s2961_s3 + $0x218] sm:$0xff]  }
 0x12d   : > { %2197 = vmatprep.subr.bf16.mxu1 %v2439_v2  ;;  %2188 = vmatmul.mubr.bf16.gmra.mrb[24].mxu0 %v816_v31  ;;  %v2429_v31 = vld [vmem:[%s2961_s3 + $0x230] sm:$0xff]  }
 0x12e   : > { %2228 = vmatpush3.bf16.msra.mxu0 %v2396_v30  ;;  %2191 = vmatprep.mubr.msk.bf16.mxu0 %vm2440_vm0, %v2439_v2  ;;  %v2428_v30 = vld [vmem:[%s2961_s3 + $0x228] sm:$0xff]  }
 0x12f   : > { %2229 = vmatprep.subr.bf16.mxu0 %v2439_v2 }
 0x130   : > { %2198 = vmatpush3.bf16.msra.mxu1 %v2393_v32  ;;  %v2430_v32 = vld [vmem:[%s2961_s3 + $0x238] sm:$0xff]  }
 0x131   : > { %2199 = vmatprep.subr.bf16.mxu1 %v2439_v2 }
 0x132   : > { %2230 = vmatpush3.bf16.msra.mxu0 %v2398_v34  ;;  %v1487_v34 = vpack.c.bf16 %v1484_v33, %v1484_v33 }
 0x133   : > { %2160 = vmatmul.mubr.bf16.gmra.mrb[16].mxu1 %v682_v38  ;;  %2231 = vmatprep.subr.bf16.mxu0 %v2439_v2 }
 0x134   : > { %2200 = vmatpush3.bf16.msra.mxu1 %v2395_v37  ;;  %2163 = vmatprep.mubr.msk.bf16.mxu1 %vm2440_vm0, %v2439_v2 }
 0x135   : > { %2201 = vmatprep.subr.bf16.mxu1 %v2439_v2  ;;  %2192 = vmatmul.mubr.bf16.gmra.mrb[28].mxu0 %v817_v44 }
 0x136   : > { %2232 = vmatpush3.bf16.msra.mxu0 %v2400_v42  ;;  %2239 = vmatprep.mubr.msk.bf16.mxu0 %vm2440_vm0, %v2439_v2 }
 0x137   : > { %2233 = vmatprep.subr.bf16.mxu0 %v2439_v2 }
 0x138   : > { %2202 = vmatpush3.bf16.msra.mxu1 %v2397_v45 }
 0x139   : > { %2203 = vmatprep.subr.bf16.mxu1 %v2439_v2 }
 0x13a   : > { %2234 = vmatpush3.bf16.msra.mxu0 %v2402_v48 }
 0x13b   : > { %2164 = vmatmul.mubr.bf16.gmra.mrb[20].mxu1 %v683_v50  ;;  %2235 = vmatprep.subr.bf16.mxu0 %v2439_v2 }
 0x13c   : > { %2204 = vmatpush3.bf16.msra.mxu1 %v2399_v49  ;;  %2211 = vmatprep.mubr.msk.bf16.mxu1 %vm2440_vm0, %v2439_v2 }
 0x13d   : > { %2205 = vmatprep.subr.bf16.mxu1 %v2439_v2 }
 0x13e   : > { %2236 = vmatpush3.bf16.msra.mxu0 %v2404_v51 }
 0x13f   : > { %2237 = vmatprep.subr.bf16.mxu0 %v2439_v2 }
 0x140   : > { %2206 = vmatpush3.bf16.msra.mxu1 %v2401_v52 }
 0x141   : > { %2207 = vmatprep.subr.bf16.mxu1 %v2439_v2 }
 0x142   : > { %2238 = vmatpush3.bf16.msra.mxu0 %v2406_v53 }
 0x143   : > { %2279 = vmatprep.subr.bf16.mxu0 %v2439_v2 }
 0x144   : > { %2208 = vmatpush3.bf16.msra.mxu1 %v2403_v55 }
 0x145   : > { %2209 = vmatprep.subr.bf16.mxu1 %v2439_v2  ;;  %2240 = vmatmul.mubr.bf16.vlgmr.msra.gmra.mrb[32].mxu0 %v1083_v60 }
 0x146   : > { %2280 = vmatpush3.bf16.msra.mxu0 %v2408_v58  ;;  %2243 = vmatprep.mubr.msk.bf16.mxu0 %vm2440_vm0, %v2439_v2 }
 0x147   : > { %2281 = vmatprep.subr.bf16.mxu0 %v2439_v2 }
 0x148   : > { %2210 = vmatpush3.bf16.msra.mxu1 %v2405_v61 }
 0x149   : > { %2251 = vmatprep.subr.bf16.mxu1 %v2439_v2 }
 0x14a   : > { %2282 = vmatpush3.bf16.msra.mxu0 %v2410_v62 }
 0x14b   : > { %2212 = vmatmul.mubr.bf16.vlgmr.msra.gmra.mrb[24].mxu1 %v949_v46  ;;  %2283 = vmatprep.subr.bf16.mxu0 %v2439_v2  ;;  %v1082_v46 = vld [vmem:[#allocation2 + $0x29] sm:$0xff] }
 0x14c   : > { %2252 = vmatpush3.bf16.msra.mxu1 %v2407_v59  ;;  %2215 = vmatprep.mubr.msk.bf16.mxu1 %vm2440_vm0, %v2439_v2  ;;  %v1085_v5 = vpack.c.bf16 %v1082_v46, %v1082_v46 }
 0x14d   : > { %2253 = vmatprep.subr.bf16.mxu1 %v2439_v2  ;;  %2244 = vmatmul.mubr.bf16.gmra.mrb[36].mxu0 %v1084_v1 }
 0x14e   : > { %2284 = vmatpush3.bf16.msra.mxu0 %v2412_v0  ;;  %2247 = vmatprep.mubr.msk.bf16.mxu0 %vm2440_vm0, %v2439_v2 }
 0x14f   : > { %2285 = vmatprep.subr.bf16.mxu0 %v2439_v2 }
 0x150   : > { %2254 = vmatpush3.bf16.msra.mxu1 %v2409_v4 }
 0x151   : > { %2255 = vmatprep.subr.bf16.mxu1 %v2439_v2 }
 0x152   : > { %2286 = vmatpush3.bf16.msra.mxu0 %v2414_v35 }
 0x153   : > { %2216 = vmatmul.mubr.bf16.gmra.mrb[28].mxu1 %v950_v57  ;;  %2287 = vmatprep.subr.bf16.mxu0 %v2439_v2  ;;  %v2415_v57 = vld [vmem:[%s2961_s3 + $0x1a0] sm:$0xff]  }
 0x154   : > { %2256 = vmatpush3.bf16.msra.mxu1 %v2411_v41  ;;  %2219 = vmatprep.mubr.msk.bf16.mxu1 %vm2440_vm0, %v2439_v2 }
 0x155   : > { %2257 = vmatprep.subr.bf16.mxu1 %v2439_v2  ;;  %2248 = vmatmul.mubr.bf16.gmra.mrb[40].mxu0 %v1085_v5 }
 0x156   : > { %2288 = vmatpush3.bf16.msra.mxu0 %v2416_v3  ;;  %2295 = vmatprep.mubr.msk.bf16.mxu0 %vm2440_vm0, %v2439_v2 }
 0x157   : > { %2289 = vmatprep.subr.bf16.mxu0 %v2439_v2 }
 0x158   : > { %2258 = vmatpush3.bf16.msra.mxu1 %v2413_v6 }
 0x159   : > { %2259 = vmatprep.subr.bf16.mxu1 %v2439_v2 }
 0x15a   : > { %2290 = vmatpush3.bf16.msra.mxu0 %v2418_v40 }
 0x15b   : > { %2220 = vmatmul.mubr.bf16.gmra.mrb[32].mxu1 %v951_v7  ;;  %2291 = vmatprep.subr.bf16.mxu0 %v2439_v2 }
 0x15c   : > { %2260 = vmatpush3.bf16.msra.mxu1 %v2415_v57  ;;  %2267 = vmatprep.mubr.msk.bf16.mxu1 %vm2440_vm0, %v2439_v2 }
 0x15d   : > { %2261 = vmatprep.subr.bf16.mxu1 %v2439_v2 }
 0x15e   : > { %2292 = vmatpush3.bf16.msra.mxu0 %v2420_v8 }
 0x15f   : > { %2293 = vmatprep.subr.bf16.mxu0 %v2439_v2 }
 0x160   : > { %2262 = vmatpush3.bf16.msra.mxu1 %v2417_v9 }
 0x161   : > { %2263 = vmatprep.subr.bf16.mxu1 %v2439_v2 }
 0x162   : > { %2294 = vmatpush3.bf16.msra.mxu0 %v2422_v10 }
 0x164   : > { %2264 = vmatpush3.bf16.msra.mxu1 %v2419_v11 }
 0x165   : > { %2265 = vmatprep.subr.bf16.mxu1 %v2439_v2  ;;  %2296 = vmatmul.mubr.bf16.vlgmr.msra.gmra.mrb[44].mxu0 %v1351_v12 }
 0x166   : > { %2299 = vmatprep.mubr.msk.bf16.mxu0 %vm2440_vm0, %v2439_v2 }
 0x168   : > { %2266 = vmatpush3.bf16.msra.mxu1 %v2421_v13 }
 0x169   : > { %2307 = vmatprep.subr.bf16.mxu1 %v2439_v2 }
 0x16b   : > { %2268 = vmatmul.mubr.bf16.vlgmr.msra.gmra.mrb[36].mxu1 %v1217_v17 }
 0x16c   : > { %2308 = vmatpush3.bf16.msra.mxu1 %v2423_v16  ;;  %2271 = vmatprep.mubr.msk.bf16.mxu1 %vm2440_vm0, %v2439_v2 }
 0x16d   : > { %2309 = vmatprep.subr.bf16.mxu1 %v2439_v2  ;;  %2300 = vmatmul.mubr.bf16.gmra.mrb[48].mxu0 %v1352_v18 }
 0x16e   : > { %2303 = vmatprep.mubr.msk.bf16.mxu0 %vm2440_vm0, %v2439_v2 }
 0x170   : > { %2310 = vmatpush3.bf16.msra.mxu1 %v2424_v19 }
 0x171   : > { %2311 = vmatprep.subr.bf16.mxu1 %v2439_v2 }
 0x173   : > { %2272 = vmatmul.mubr.bf16.gmra.mrb[40].mxu1 %v1218_v24 }
 0x174   : > { %2312 = vmatpush3.bf16.msra.mxu1 %v2425_v22  ;;  %2275 = vmatprep.mubr.msk.bf16.mxu1 %vm2440_vm0, %v2439_v2 }
 0x175   : > { %2313 = vmatprep.subr.bf16.mxu1 %v2439_v2  ;;  %2304 = vmatmul.mubr.bf16.gmra.mrb[52].mxu0 %v1353_v25 }
 0x178   : > { %2314 = vmatpush3.bf16.msra.mxu1 %v2426_v26 }
 0x179   : > { %2315 = vmatprep.subr.bf16.mxu1 %v2439_v2 }
 0x17b   : > { %2276 = vmatmul.mubr.bf16.gmra.mrb[44].mxu1 %v1219_v29 }
 0x17c   : > { %2316 = vmatpush3.bf16.msra.mxu1 %v2427_v28  ;;  %2323 = vmatprep.mubr.msk.bf16.mxu1 %vm2440_vm0, %v2439_v2 }
 0x17d   : > { %2317 = vmatprep.subr.bf16.mxu1 %v2439_v2 }
 0x180   : > { %2318 = vmatpush3.bf16.msra.mxu1 %v2428_v30 }
 0x181   : > { %2319 = vmatprep.subr.bf16.mxu1 %v2439_v2 }
 0x184   : > { %2320 = vmatpush3.bf16.msra.mxu1 %v2429_v31 }
 0x185   : > { %2321 = vmatprep.subr.bf16.mxu1 %v2439_v2 }
 0x188   : > { %2322 = vmatpush3.bf16.msra.mxu1 %v2430_v32 }
 0x18b   : > { %2324 = vmatmul.mubr.bf16.vlgmr.msra.gmra.mrb[48].mxu1 %v2603_v43 }
 0x18c   : > { %2327 = vmatprep.mubr.msk.bf16.mxu1 %vm2440_vm0, %v2439_v2 }
 0x193   : > { %2328 = vmatmul.mubr.bf16.gmra.mrb[52].mxu1 %v1486_v63 }
 0x194   : > { %2331 = vmatprep.mubr.msk.bf16.mxu1 %vm2440_vm0, %v2439_v2 }
 0x19b   : > { %2332 = vmatmul.mubr.bf16.gmra.mrb[56].mxu1 %v1487_v34 }
 0x1d6   : > { %v654_v36 = vpop.f32.mrb[8].mxu0 }
 0x1d7   : > { %v2129_v37 = vpop.f32.mrb[9].mxu0 }
 0x1d8   : > { %v657_v38 = vpop.f32.mrb[10].mxu0 }
 0x1d9   : > { %v2130_v39 = vpop.f32.mrb[11].mxu0 }
 0x1de   : > { %v550_v42 = vpop.f32.mrb[0].mxu1  ;;  %v662_v44 = vpop.f32.mrb[12].mxu0 }
 0x1df   : > { %v655_v43 = vadd.f32 %v654_v36, %v550_v42  ;;  %v2101_v45 = vpop.f32.mrb[1].mxu1  ;;  %v2133_v47 = vpop.f32.mrb[13].mxu0 }
 0x1e0   : > { %v553_v48 = vpop.f32.mrb[2].mxu1  ;;  %v665_v49 = vpop.f32.mrb[14].mxu0 }
 0x1e1   : > { %v658_v50 = vadd.f32 %v657_v38, %v553_v48  ;;  %v2102_v54 = vpop.f32.mrb[3].mxu1  ;;  %v2134_v56 = vpop.f32.mrb[15].mxu0 }
 0x1e6   : > { %v558_v63 = vpop.f32.mrb[4].mxu1  ;;  %v670_v51 = vpop.f32.mrb[16].mxu0 }
 0x1e7   : > { %v663_v2 = vadd.f32 %v662_v44, %v558_v63  ;;  %v2105_v52 = vpop.f32.mrb[5].mxu1  ;;  %v2137_v53 = vpop.f32.mrb[17].mxu0 }
 0x1e8   : > { %v561_v55 = vpop.f32.mrb[6].mxu1  ;;  %v673_v58 = vpop.f32.mrb[18].mxu0 }
 0x1e9   : > { %v666_v60 = vadd.f32 %v665_v49, %v561_v55  ;;  %v2106_v61 = vpop.f32.mrb[7].mxu1  ;;  %v2138_v62 = vpop.f32.mrb[19].mxu0 }
 0x1ee   : > { %v566_v59 = vpop.f32.mrb[8].mxu1 }
 0x1ef   : > { %v671_v0 = vadd.f32 %v670_v51, %v566_v59  ;;  %v2109_v1 = vpop.f32.mrb[9].mxu1 }
 0x1f0   : > { %v569_v4 = vpop.f32.mrb[10].mxu1 }
 0x1f1   : > { %v2110_v35 = vpop.f32.mrb[11].mxu1 }
 0x1f7   : > { %v917_v41 = vpop.f32.mrb[20].mxu0 }
 0x1f8   : > { %v2185_v46 = vpop.f32.mrb[21].mxu0 }
 0x1f9   : > { %v920_v3 = vpop.f32.mrb[22].mxu0 }
 0x1fa   : > { %v2186_v5 = vpop.f32.mrb[23].mxu0 }
 0x1fe   : > { %v783_v6 = vpop.f32.mrb[12].mxu1 }
 0x1ff   : > { %v805_v40 = vadd.f32 %v783_v6, %v655_v43  ;;  %v2157_v57 = vpop.f32.mrb[13].mxu1 }
 0x200   : > { %v786_v7 = vpop.f32.mrb[14].mxu1  ;;  %v925_v8 = vpop.f32.mrb[24].mxu0 }
 0x201   : > { %v939_v9 = vadd.f32 %v917_v41, %v805_v40  ;;  %v806_v10 = vadd.f32 %v786_v7, %v658_v50  ;;  %v2158_v11 = vpop.f32.mrb[15].mxu1  ;;  %v2189_v12 = vpop.f32.mrb[25].mxu0 }
 0x202   : > { %v928_v13 = vpop.f32.mrb[26].mxu0 }
 0x203   : > { %v940_v14 = vadd.f32 %v920_v3, %v806_v10  ;;  %v2190_v15 = vpop.f32.mrb[27].mxu0 }
 0x206   : > { %v791_v16 = vpop.f32.mrb[16].mxu1 }
 0x207   : > { %v807_v17 = vadd.f32 %v791_v16, %v663_v2  ;;  %v2161_v18 = vpop.f32.mrb[17].mxu1 }
 0x208   : > { %v794_v19 = vpop.f32.mrb[18].mxu1  ;;  %v933_v20 = vpop.f32.mrb[28].mxu0 }
 0x209   : > { %v941_v21 = vadd.f32 %v925_v8, %v807_v17  ;;  %v808_v22 = vadd.f32 %v794_v19, %v666_v60  ;;  %v2162_v23 = vpop.f32.mrb[19].mxu1  ;;  %v2193_v24 = vpop.f32.mrb[29].mxu0 }
 0x20a   : > { %v936_v25 = vpop.f32.mrb[30].mxu0 }
 0x20b   : > { %v942_v26 = vadd.f32 %v928_v13, %v808_v22  ;;  %v2194_v27 = vpop.f32.mrb[31].mxu0 }
 0x20e   : > { %v799_v28 = vpop.f32.mrb[20].mxu1 }
 0x20f   : > { %v809_v29 = vadd.f32 %v799_v28, %v671_v0  ;;  %v2165_v30 = vpop.f32.mrb[21].mxu1 }
 0x210   : > { %v802_v31 = vpop.f32.mrb[22].mxu1 }
 0x211   : > { %v943_v32 = vadd.f32 %v933_v20, %v809_v29  ;;  %v2166_v33 = vpop.f32.mrb[23].mxu1 }
 0x218   : > { %v1185_v34 = vpop.f32.mrb[32].mxu0 }
 0x219   : > { %v2241_v36 = vpop.f32.mrb[33].mxu0 }
 0x21a   : > { %v1188_v37 = vpop.f32.mrb[34].mxu0 }
 0x21b   : > { %v2242_v38 = vpop.f32.mrb[35].mxu0 }
 0x21e   : > { %v1051_v39 = vpop.f32.mrb[24].mxu1 }
 0x21f   : > { %v1073_v42 = vadd.f32 %v1051_v39, %v939_v9  ;;  %v2213_v44 = vpop.f32.mrb[25].mxu1 }
 0x220   : > { %v1054_v43 = vpop.f32.mrb[26].mxu1  ;;  %v1193_v45 = vpop.f32.mrb[36].mxu0 }
 0x221   : > { %v1207_v47 = vadd.f32 %v1185_v34, %v1073_v42  ;;  %v1074_v48 = vadd.f32 %v1054_v43, %v940_v14  ;;  %v2214_v49 = vpop.f32.mrb[27].mxu1  ;;  %v2245_v50 = vpop.f32.mrb[37].mxu0  ;;  %v1937_v42 = vld [vmem:[%s2962_s4] ss:$0 sm:$0xff] }
 0x222   : > { %v1196_v54 = vpop.f32.mrb[38].mxu0 }
 0x223   : > { %v1208_v56 = vadd.f32 %v1188_v37, %v1074_v48  ;;  %v2246_v63 = vpop.f32.mrb[39].mxu0 }
 0x226   : > { %v1059_v51 = vpop.f32.mrb[28].mxu1 }
 0x227   : > { %v1075_v2 = vadd.f32 %v1059_v51, %v941_v21  ;;  %v2217_v52 = vpop.f32.mrb[29].mxu1 }
 0x228   : > { %v1062_v53 = vpop.f32.mrb[30].mxu1  ;;  %v1201_v55 = vpop.f32.mrb[40].mxu0 }
 0x229   : > { %v1209_v58 = vadd.f32 %v1193_v45, %v1075_v2  ;;  %v1076_v60 = vadd.f32 %v1062_v53, %v942_v26  ;;  %v2218_v61 = vpop.f32.mrb[31].mxu1  ;;  %v2249_v62 = vpop.f32.mrb[41].mxu0 }
 0x22a   : > { %v1204_v59 = vpop.f32.mrb[42].mxu0 }
 0x22b   : > { %v1210_v0 = vadd.f32 %v1196_v54, %v1076_v60  ;;  %v2250_v1 = vpop.f32.mrb[43].mxu0 }
 0x22e   : > { %v1067_v4 = vpop.f32.mrb[32].mxu1 }
 0x22f   : > { %v1077_v35 = vadd.f32 %v1067_v4, %v943_v32  ;;  %v2221_v41 = vpop.f32.mrb[33].mxu1 }
 0x230   : > { %v1070_v46 = vpop.f32.mrb[34].mxu1 }
 0x231   : > { %v1211_v3 = vadd.f32 %v1201_v55, %v1077_v35  ;;  %v2222_v5 = vpop.f32.mrb[35].mxu1 }
 0x238   : > { %v1453_v6 = vpop.f32.mrb[44].mxu0 }
 0x239   : > { %v2297_v40 = vpop.f32.mrb[45].mxu0 }
 0x23a   : > { %v1456_v57 = vpop.f32.mrb[46].mxu0 }
 0x23b   : > { %v2298_v7 = vpop.f32.mrb[47].mxu0 }
 0x23e   : > { %v1319_v8 = vpop.f32.mrb[36].mxu1 }
 0x23f   : > { %v1341_v9 = vadd.f32 %v1319_v8, %v1207_v47  ;;  %v2269_v10 = vpop.f32.mrb[37].mxu1 }
 0x240   : > { %v1322_v11 = vpop.f32.mrb[38].mxu1  ;;  %v1461_v12 = vpop.f32.mrb[48].mxu0 }
 0x241   : > { %v1475_v13 = vadd.f32 %v1453_v6, %v1341_v9  ;;  %v1342_v14 = vadd.f32 %v1322_v11, %v1208_v56  ;;  %v2270_v15 = vpop.f32.mrb[39].mxu1  ;;  %v2301_v16 = vpop.f32.mrb[49].mxu0 }
 0x242   : > { %v1464_v17 = vpop.f32.mrb[50].mxu0 }
 0x243   : > { %v1476_v18 = vadd.f32 %v1456_v57, %v1342_v14  ;;  %v2302_v19 = vpop.f32.mrb[51].mxu0 }
 0x246   : > { %v1327_v20 = vpop.f32.mrb[40].mxu1 }
 0x247   : > { %v1343_v21 = vadd.f32 %v1327_v20, %v1209_v58  ;;  %v2273_v22 = vpop.f32.mrb[41].mxu1 }
 0x248   : > { %v1330_v23 = vpop.f32.mrb[42].mxu1  ;;  %v1469_v24 = vpop.f32.mrb[52].mxu0 }
 0x249   : > { %v1477_v25 = vadd.f32 %v1461_v12, %v1343_v21  ;;  %v1344_v26 = vadd.f32 %v1330_v23, %v1210_v0  ;;  %v2274_v27 = vpop.f32.mrb[43].mxu1  ;;  %v2305_v28 = vpop.f32.mrb[53].mxu0 }
 0x24a   : > { %v1472_v29 = vpop.f32.mrb[54].mxu0 }
 0x24b   : > { %v1478_v30 = vadd.f32 %v1464_v17, %v1344_v26  ;;  %v2306_v31 = vpop.f32.mrb[55].mxu0 }
 0x24e   : > { %v1335_v32 = vpop.f32.mrb[44].mxu1 }
 0x24f   : > { %v1345_v33 = vadd.f32 %v1335_v32, %v1211_v3  ;;  %v2277_v34 = vpop.f32.mrb[45].mxu1 }
 0x250   : > { %v1338_v36 = vpop.f32.mrb[46].mxu1 }
 0x251   : > { %v1479_v37 = vadd.f32 %v1469_v24, %v1345_v33  ;;  %v2278_v38 = vpop.f32.mrb[47].mxu1 }
 0x25e   : > { %v1587_v39 = vpop.f32.mrb[48].mxu1 }
 0x25f   : > { %v1609_v44 = vadd.f32 %v1587_v39, %v1475_v13  ;;  %v2325_v43 = vpop.f32.mrb[49].mxu1 }
 0x260   : > { %v1590_v45 = vpop.f32.mrb[50].mxu1 }
 0x261   : > { %v1621_v47 = vadd.f32 %v1937_v42, %v1609_v44  ;;  %v1610_v48 = vadd.f32 %v1590_v45, %v1476_v18  ;;  %v2326_v49 = vpop.f32.mrb[51].mxu1 }
 0x263   : > { %v1626_v50 = vmax.f32 %v1621_v47, 0.0  ;;  %v1622_v54 = vadd.f32 %v1937_v42, %v1610_v48 }
 0x265   : > { %1632 = vst.msk [vmem:[%s2944_s7] sm:$0x1f] %vm1631_vm1, %v1626_v50  ;;  %v1627_v56 = vmax.f32 %v1622_v54, 0.0 }
 0x266   : > { %1938 = vst.msk [vmem:[%s2944_s7 + $0x1] sm:$0x80] %vm1634_vm2, %v1626_v50  ;;  %v1595_v63 = vpop.f32.mrb[52].mxu1 }
 0x267   : > { %1939 = vst.msk [vmem:[%s2944_s7 + $0x9] sm:$0xf] %vm1636_vm3, %v1627_v56  ;;  %v1611_v51 = vadd.f32 %v1595_v63, %v1477_v25  ;;  %v2329_v2 = vpop.f32.mrb[53].mxu1 }
 0x268   : > { %1940 = vst.msk [vmem:[%s2944_s7 + $0xa] sm:$0xc0] %vm1639_vm4, %v1627_v56  ;;  %v1598_v52 = vpop.f32.mrb[54].mxu1 }
 0x269   : > { %v1623_v53 = vadd.f32 %v1937_v42, %v1611_v51  ;;  %v1612_v55 = vadd.f32 %v1598_v52, %v1478_v30  ;;  %v2330_v58 = vpop.f32.mrb[55].mxu1 }
 0x26b   : > { %v1628_v60 = vmax.f32 %v1623_v53, 0.0  ;;  %v1624_v61 = vadd.f32 %v1937_v42, %v1612_v55 }
 0x26d   : > { %1941 = vst.msk [vmem:[%s2944_s7 + $0x12] sm:$0x7] %vm1641_vm5, %v1628_v60  ;;  %v1629_v62 = vmax.f32 %v1624_v61, 0.0 }
 0x26e   : > { %1942 = vst.msk [vmem:[%s2944_s7 + $0x13] sm:$0xe0] %vm1644_vm6, %v1628_v60  ;;  %v1603_v59 = vpop.f32.mrb[56].mxu1 }
 0x26f   : > { %1943 = vst.msk [vmem:[%s2944_s7 + $0x1b] sm:$0x3] %vm1646_vm7, %v1629_v62  ;;  %v1613_v0 = vadd.f32 %v1603_v59, %v1479_v37  ;;  %v2333_v1 = vpop.f32.mrb[57].mxu1 }
 0x270   : > { %1944 = vst.msk [vmem:[%s2944_s7 + $0x1c] sm:$0xf0] %vm1649_vm8, %v1629_v62  ;;  %v1606_v4 = vpop.f32.mrb[58].mxu1 }
 0x271   : > { %v1625_v35 = vadd.f32 %v1937_v42, %v1613_v0  ;;  %v2334_v41 = vpop.f32.mrb[59].mxu1 }
 0x273   : > { %v1630_v46 = vmax.f32 %v1625_v35, 0.0 }
 0x275   : > { %1945 = vst.msk [vmem:[%s2944_s7 + $0x24] sm:$0x1] %vm1651_vm9, %v1630_v46 }
 0x276 PF: > { %s15_s18 = sadd.s32 1, %s2437_s18  }
 0x277   : > { %p12_p4 = scmp.ge.s32.totalorder %s15_s18, 4  }
 0x279   :  { %14 = sbr.rel (!%p12_p4) target bundleno = 1 (0x1), region = 85 }

</bundles_post_ra>
